<compile_context>
chip_gen: v7x
topology: tpu7x:2x2x1
jax: 0.10.0
libtpu: 0.0.40
codegen_flags: <defaults>
</compile_context>

<pallas_src>
import functools

import jax
import jax.numpy as jnp
from jax.experimental import pallas as pl
from jax.experimental.pallas import tpu as pltpu


D_IN, D_H1, D_H2, D_OUT = 8, 6, 4, 1
D_PAD = 8                # every feature dim zero-padded to 8
GROUP = 16               # samples interleaved per 128-lane row
LANES = GROUP * D_PAD    # 128


def mlp_kernel(x_ref, w12_ref, b12_ref, w3_ref, b3_ref, o_ref):
    # x_ref: (block_rows, 128) -- 16 samples per row, 8 features each.
    h = x_ref[...]
    for layer in range(2):
        w = w12_ref[layer]                  # (128, 128) block-diagonal weight
        b = b12_ref[layer]                  # (1, 128)   group-tiled bias
        h = jax.nn.sigmoid(
            jnp.dot(h, w, preferred_element_type=jnp.float32) + b)
    # Layer 3: block-diag weight with the per-group compaction folded in, so
    # the result is already the dense (block_rows, 16) per-sample output.
    o_ref[...] = jax.nn.sigmoid(
        jnp.dot(h, w3_ref[...], preferred_element_type=jnp.float32)
        + b3_ref[...])


def pack_params(w1, b1, w2, b2, w3, b3):
    """Build lane-interleaved params.

    Zero-padding invariant (keeps padded columns inert): a padded hidden
    column becomes sigmoid(0)=0.5 but always multiplies an all-zero weight
    row in the next layer, so it never contributes.
    """
    eye = jnp.eye(GROUP, dtype=jnp.float32)

    def pad_w(w):
        return (jnp.zeros((D_PAD, D_PAD), jnp.float32)
                .at[: w.shape[0], : w.shape[1]].set(w))

    def pad_b(b):
        return jnp.zeros((D_PAD,), jnp.float32).at[: b.shape[0]].set(b)

    w12 = jnp.stack([jnp.kron(eye, pad_w(w1)),
                     jnp.kron(eye, pad_w(w2))])                     # (2,128,128)
    b12 = jnp.stack([jnp.tile(pad_b(b1), GROUP)[None, :],
                     jnp.tile(pad_b(b2), GROUP)[None, :]])          # (2,1,128)
    # Layer 3 (out_features=1): column i of (128,16) reads sample i's group.
    w3c = jnp.kron(eye, pad_b(w3[:, 0])[:, None])                   # (128,16)
    b3c = jnp.full((1, GROUP), b3[0], jnp.float32)                  # (1,16)
    return w12, b12, w3c, b3c


def _choose_block_rows(n_rows, max_block_rows):
    # Multiple of 8 sublanes, capped, and small enough to keep >= 2 grid
    # steps when possible so v7x's two TensorCores both get work.
    half = pl.cdiv(n_rows, 2)
    rows = max(8, pl.cdiv(half, 8) * 8)
    return min(max_block_rows, rows)


@functools.partial(jax.jit, static_argnames=("max_block_rows",))
def mlp_forward(x, params, *, max_block_rows=256):
    w12, b12, w3c, b3c = params
    n = x.shape[0]
    n_rows = pl.cdiv(n, GROUP)
    block_rows = _choose_block_rows(n_rows, max_block_rows)
    n_rows_pad = pl.cdiv(n_rows, block_rows) * block_rows
    n_pad = n_rows_pad * GROUP

    # Pad only when the batch is not already tile-aligned (avoids an extra
    # HBM pass for large aligned batches); padded rows are discarded below.
    if n_pad != n:
        x = jnp.pad(x, ((0, n_pad - n), (0, 0)))
    # Free (bitcast) reshape: 16 consecutive samples share one 128-lane row.
    x_rows = x.reshape(n_rows_pad, LANES)

    out = pl.pallas_call(
        mlp_kernel,
        out_shape=jax.ShapeDtypeStruct((n_rows_pad, GROUP), jnp.float32),
        grid=(n_rows_pad // block_rows,),
        in_specs=[
            pl.BlockSpec((block_rows, LANES), lambda i: (i, 0)),
            # Constant index_maps -> params DMA'd once, VMEM-resident.
            pl.BlockSpec((2, LANES, LANES), lambda i: (0, 0, 0)),
            pl.BlockSpec((2, 1, LANES), lambda i: (0, 0, 0)),
            pl.BlockSpec((LANES, GROUP), lambda i: (0, 0)),
            pl.BlockSpec((1, GROUP), lambda i: (0, 0)),
        ],
        out_specs=pl.BlockSpec((block_rows, GROUP), lambda i: (i, 0)),
        compiler_params=pltpu.CompilerParams(
            dimension_semantics=("parallel",),
        ),
    )(x_rows, w12, b12, w3c, b3c)

    # (n_rows_pad, 16) -> (n_pad, 1) is a free reshape; drop padded samples.
    return out.reshape(n_pad, 1)[:n]


def init_linear(key, fan_in, fan_out):
    # torch.nn.Linear-style U(-1/sqrt(fan_in), 1/sqrt(fan_in)) init.
    kw, kb = jax.random.split(key)
    bound = 1.0 / float(fan_in) ** 0.5
    w = jax.random.uniform(kw, (fan_in, fan_out), jnp.float32, -bound, bound)
    b = jax.random.uniform(kb, (fan_out,), jnp.float32, -bound, bound)
    return w, b


if __name__ == "__main__":
    key = jax.random.PRNGKey(0)
    kx, k1, k2, k3 = jax.random.split(key, 4)

    # Small batch, deliberately not tile-aligned: exercises padding and still
    # yields 2 parallel grid steps (block_rows=32 -> 512 samples per tile).
    n = 1000
    x = jax.random.normal(kx, (n, D_IN), jnp.float32)

    w1, b1 = init_linear(k1, D_IN, D_H1)
    w2, b2 = init_linear(k2, D_H1, D_H2)
    w3, b3 = init_linear(k3, D_H2, D_OUT)
    params = pack_params(w1, b1, w2, b2, w3, b3)

    out = mlp_forward(x, params)
    out = jax.block_until_ready(out)

    # Pure-JAX reference (same math, outside the kernel).
    ref = jax.nn.sigmoid(x @ w1 + b1)
    ref = jax.nn.sigmoid(ref @ w2 + b2)
    ref = jax.nn.sigmoid(ref @ w3 + b3)

    assert out.shape == (n, D_OUT)
    assert jnp.allclose(out, ref, atol=1e-5), "mismatch vs reference"
    print("KERNEL_OK")
</pallas_src>

<mosaic_0001>
module attributes {stable_mosaic.version = 11 : i64} {
  func.func @mlp_kernel(%arg0: i32, %arg1: memref<32x128xf32, #tpu.memory_space<vmem>>, %arg2: memref<2x128x128xf32, #tpu.memory_space<vmem>>, %arg3: memref<2x1x128xf32, #tpu.memory_space<vmem>>, %arg4: memref<128x16xf32, #tpu.memory_space<vmem>>, %arg5: memref<1x16xf32, #tpu.memory_space<vmem>>, %arg6: memref<32x16xf32, #tpu.memory_space<vmem>>) attributes {dimension_semantics = [#tpu.dimension_semantics<parallel>], iteration_bounds = array<i64: 2>, scalar_prefetch = 0 : i64, scratch_operands = 0 : i64, tpu.core_type = #tpu.core_type<tc>, window_params = [{transform_indices = @transform_0, window_bounds = array<i64: 32, 128>}, {pipeline_mode = #tpu.pipeline_mode<synchronous>, transform_indices = @transform_1, window_bounds = array<i64: 2, 128, 128>}, {pipeline_mode = #tpu.pipeline_mode<synchronous>, transform_indices = @transform_2, window_bounds = array<i64: 2, 1, 128>}, {pipeline_mode = #tpu.pipeline_mode<synchronous>, transform_indices = @transform_3, window_bounds = array<i64: 128, 16>}, {pipeline_mode = #tpu.pipeline_mode<synchronous>, transform_indices = @transform_4, window_bounds = array<i64: 1, 16>}, {transform_indices = @transform_5, window_bounds = array<i64: 32, 16>}]} {
    %c0 = arith.constant 0 : index
    %c0_0 = arith.constant 0 : index
    %0 = vector.load %arg1[%c0, %c0_0] : memref<32x128xf32, #tpu.memory_space<vmem>>, vector<32x128xf32>
    %c0_1 = arith.constant 0 : index
    %c0_2 = arith.constant 0 : index
    %c0_3 = arith.constant 0 : index
    %1 = vector.load %arg2[%c0_1, %c0_2, %c0_3] : memref<2x128x128xf32, #tpu.memory_space<vmem>>, vector<1x128x128xf32>
    %2 = vector.shape_cast %1 : vector<1x128x128xf32> to vector<128x128xf32>
    %c0_4 = arith.constant 0 : index
    %c0_5 = arith.constant 0 : index
    %c0_6 = arith.constant 0 : index
    %3 = vector.load %arg3[%c0_4, %c0_5, %c0_6] : memref<2x1x128xf32, #tpu.memory_space<vmem>>, vector<1x1x128xf32>
    %4 = vector.shape_cast %3 : vector<1x1x128xf32> to vector<1x128xf32>
    %cst = arith.constant dense<0.000000e+00> : vector<32x128xf32>
    %5 = tpu.matmul %0, %2, %cst {dimension_numbers = #tpu.dot_dimension_numbers<[1], [0], [0], [1], [0, 0, 1, 1], [], []>} : vector<32x128xf32>, vector<128x128xf32>, vector<32x128xf32> -> vector<32x128xf32>
    %6 = vector.broadcast %4 : vector<1x128xf32> to vector<32x128xf32>
    %7 = arith.addf %5, %6 : vector<32x128xf32>
    %8 = arith.negf %7 : vector<32x128xf32>
    %9 = math.exp %8 : vector<32x128xf32>
    %cst_7 = arith.constant 1.000000e+00 : f32
    %10 = vector.broadcast %cst_7 : f32 to vector<32x128xf32>
    %11 = arith.addf %10, %9 : vector<32x128xf32>
    %12 = arith.divf %10, %11 : vector<32x128xf32>
    %c1 = arith.constant 1 : index
    %c0_8 = arith.constant 0 : index
    %c0_9 = arith.constant 0 : index
    %13 = vector.load %arg2[%c1, %c0_8, %c0_9] : memref<2x128x128xf32, #tpu.memory_space<vmem>>, vector<1x128x128xf32>
    %14 = vector.shape_cast %13 : vector<1x128x128xf32> to vector<128x128xf32>
    %c1_10 = arith.constant 1 : index
    %c0_11 = arith.constant 0 : index
    %c0_12 = arith.constant 0 : index
    %15 = vector.load %arg3[%c1_10, %c0_11, %c0_12] : memref<2x1x128xf32, #tpu.memory_space<vmem>>, vector<1x1x128xf32>
    %16 = vector.shape_cast %15 : vector<1x1x128xf32> to vector<1x128xf32>
    %cst_13 = arith.constant dense<0.000000e+00> : vector<32x128xf32>
    %17 = tpu.matmul %12, %14, %cst_13 {dimension_numbers = #tpu.dot_dimension_numbers<[1], [0], [0], [1], [0, 0, 1, 1], [], []>} : vector<32x128xf32>, vector<128x128xf32>, vector<32x128xf32> -> vector<32x128xf32>
    %18 = vector.broadcast %16 : vector<1x128xf32> to vector<32x128xf32>
    %19 = arith.addf %17, %18 : vector<32x128xf32>
    %20 = arith.negf %19 : vector<32x128xf32>
    %21 = math.exp %20 : vector<32x128xf32>
    %cst_14 = arith.constant 1.000000e+00 : f32
    %22 = vector.broadcast %cst_14 : f32 to vector<32x128xf32>
    %23 = arith.addf %22, %21 : vector<32x128xf32>
    %24 = arith.divf %22, %23 : vector<32x128xf32>
    %c0_15 = arith.constant 0 : index
    %c0_16 = arith.constant 0 : index
    %25 = vector.load %arg4[%c0_15, %c0_16] : memref<128x16xf32, #tpu.memory_space<vmem>>, vector<128x16xf32>
    %cst_17 = arith.constant dense<0.000000e+00> : vector<32x16xf32>
    %26 = tpu.matmul %24, %25, %cst_17 {dimension_numbers = #tpu.dot_dimension_numbers<[1], [0], [0], [1], [0, 0, 1, 1], [], []>} : vector<32x128xf32>, vector<128x16xf32>, vector<32x16xf32> -> vector<32x16xf32>
    %c0_18 = arith.constant 0 : index
    %c0_19 = arith.constant 0 : index
    %27 = vector.load %arg5[%c0_18, %c0_19] : memref<1x16xf32, #tpu.memory_space<vmem>>, vector<1x16xf32>
    %28 = vector.broadcast %27 : vector<1x16xf32> to vector<32x16xf32>
    %29 = arith.addf %26, %28 : vector<32x16xf32>
    %30 = arith.negf %29 : vector<32x16xf32>
    %31 = math.exp %30 : vector<32x16xf32>
    %cst_20 = arith.constant 1.000000e+00 : f32
    %32 = vector.broadcast %cst_20 : f32 to vector<32x16xf32>
    %33 = arith.addf %32, %31 : vector<32x16xf32>
    %34 = arith.divf %32, %33 : vector<32x16xf32>
    %c0_21 = arith.constant 0 : index
    %c0_22 = arith.constant 0 : index
    %35 = vector.load %arg6[%c0_21, %c0_22] : memref<32x16xf32, #tpu.memory_space<vmem>>, vector<32x16xf32>
    tpu.vector_store %arg6[%c0_21, %c0_22], %34 {strides = array<i32>} : memref<32x16xf32, #tpu.memory_space<vmem>>, vector<32x16xf32>,
    return
  }
  func.func @transform_0(%arg0: i32) -> (i32, i32) {
    %c0_i32 = arith.constant 0 : i32
    %c0_i32_0 = arith.constant 0 : i32
    return %arg0, %c0_i32 : i32, i32
  }
  func.func @transform_1(%arg0: i32) -> (i32, i32, i32) {
    %c0_i32 = arith.constant 0 : i32
    %c0_i32_0 = arith.constant 0 : i32
    %c0_i32_1 = arith.constant 0 : i32
    %c0_i32_2 = arith.constant 0 : i32
    return %c0_i32, %c0_i32_0, %c0_i32_1 : i32, i32, i32
  }
  func.func @transform_2(%arg0: i32) -> (i32, i32, i32) {
    %c0_i32 = arith.constant 0 : i32
    %c0_i32_0 = arith.constant 0 : i32
    %c0_i32_1 = arith.constant 0 : i32
    %c0_i32_2 = arith.constant 0 : i32
    return %c0_i32, %c0_i32_0, %c0_i32_1 : i32, i32, i32
  }
  func.func @transform_3(%arg0: i32) -> (i32, i32) {
    %c0_i32 = arith.constant 0 : i32
    %c0_i32_0 = arith.constant 0 : i32
    %c0_i32_1 = arith.constant 0 : i32
    return %c0_i32, %c0_i32_0 : i32, i32
  }
  func.func @transform_4(%arg0: i32) -> (i32, i32) {
    %c0_i32 = arith.constant 0 : i32
    %c0_i32_0 = arith.constant 0 : i32
    %c0_i32_1 = arith.constant 0 : i32
    return %c0_i32, %c0_i32_0 : i32, i32
  }
  func.func @transform_5(%arg0: i32) -> (i32, i32) {
    %c0_i32 = arith.constant 0 : i32
    %c0_i32_0 = arith.constant 0 : i32
    return %arg0, %c0_i32 : i32, i32
  }
}

</mosaic_0001>

<bundles_post_ra>
// kernel: mlp_forward.1
= control target key start
LH: loop header
LB: loop body
LE: loop exit
PB: predicated region body
PF: predicated region fallthrough
CT: control target
= control target key end

     0   :  { %s1114_s18 = smov 0   ;;  %s1297_s0 = inlined_call_operand.vmem [shape: f32[64,128], index: 0, kind: input, shape index: {}]   ;;  %s1298_s1 = inlined_call_operand.vmem [shape: f32[2,128,128], index: 1, kind: input, shape index: {}]   ;;  %s1299_s2 = inlined_call_operand.vmem [shape: f32[2,1,128], index: 2, kind: input, shape index: {}]   ;;  %s1300_s3 = inlined_call_operand.vmem [shape: f32[128,16], index: 3, kind: input, shape index: {}]   ;;  %s1301_s4 = inlined_call_operand.vmem [shape: f32[1,16], index: 4, kind: input, shape index: {}]   ;;  %s1302_s5 = inlined_call_operand.vmem [shape: f32[64,16], index: 5, kind: output, shape index: {}]  }
   0x1 LB: > { %s691_s19 = sadd.s32 4294967295, %s1082_s18   ;;  %p695_p0 = scmp.ge.s32.totalorder %s1082_s18, 1  ;;  %s1082_s18 = sphi %s1114_s18, %s15_s18  }
   0x2   : > { %p188_p1 = scmp.lt.s32.totalorder %s1082_s18, 3 }
   0x4   : > { %p189_p2 = pnand %p695_p0, %p188_p1 }
   0x5   : > { %v232_v0 = vld [vmem:[%s1298_s1] sm:$0xff] (!%p189_p2)  ;;  %v233_v1 = vld [vmem:[%s1298_s1 + $0x8] sm:$0xff] (!%p189_p2)  ;;  %v234_v2 = vld [vmem:[%s1298_s1 + $0x10] sm:$0xff] (!%p189_p2)  ;;  %s696_s26 = sshll.u32 (!%p189_p2), %s691_s19, 2  ;;  %vm630_vm0 = vcmask (!%p189_p2), 130048  }
   0x6   : > { %192 = sbr.rel (%p189_p2) target bundleno = 771 (0x303), region = 40  ;;  %v908_v3 = vpack.c.bf16 (!%p189_p2), %v233_v1, %v232_v0  ;;  %v235_v4 = vld [vmem:[%s1298_s1 + $0x18] sm:$0xff] (!%p189_p2)  ;;  %p217_p3 = scmp.lt.s32.totalorder (!%p189_p2), %s696_s26, 7  ;;  %v236_v6 = vld [vmem:[%s1298_s1 + $0x20] sm:$0xff] (!%p189_p2)  ;;  %v237_v7 = vld [vmem:[%s1298_s1 + $0x28] sm:$0xff] (!%p189_p2) }
   0x7   : > { %v912_v5 = vpack.c.bf16 (!%p189_p2), %v235_v4, %v234_v2  ;;  %v916_v8 = vpack.c.bf16 (!%p189_p2), %v237_v7, %v236_v6  ;;  %v705_v9 = vld [vmem:[%s1298_s1 + $0x80] sm:$0xff] (!%p189_p2)  ;;  %v706_v10 = vld [vmem:[%s1298_s1 + $0x88] sm:$0xff] (!%p189_p2)  ;;  %v238_v11 = vld [vmem:[%s1298_s1 + $0x30] sm:$0xff] (!%p189_p2) }
   0x8   : > { %909 = vmatprep.subr.bf16.mxu0 (!%p189_p2), %v908_v3  ;;  %v239_v12 = vld [vmem:[%s1298_s1 + $0x38] sm:$0xff] (!%p189_p2)  ;;  %v940_v13 = vpack.c.bf16 (!%p189_p2), %v706_v10, %v705_v9  ;;  %v240_v16 = vld [vmem:[%s1298_s1 + $0x40] sm:$0xff] (!%p189_p2)  ;;  %v241_v17 = vld [vmem:[%s1298_s1 + $0x48] sm:$0xff] (!%p189_p2) }
   0x9   : > { %911 = vmatpush3.bf16.msra.mxu0 (!%p189_p2), %v908_v3  ;;  %v920_v15 = vpack.c.bf16 (!%p189_p2), %v239_v12, %v238_v11  ;;  %v924_v18 = vpack.c.bf16 (!%p189_p2), %v241_v17, %v240_v16  ;;  %v242_v19 = vld [vmem:[%s1298_s1 + $0x50] sm:$0xff] (!%p189_p2)  ;;  %v243_v20 = vld [vmem:[%s1298_s1 + $0x58] sm:$0xff] (!%p189_p2)  ;;  %v244_v22 = vld [vmem:[%s1298_s1 + $0x60] sm:$0xff] (!%p189_p2) }
   0xa   : > { %913 = vmatprep.subr.bf16.mxu0 (!%p189_p2), %v912_v5  ;;  %941 = vmatprep.subr.bf16.mxu1 (!%p189_p2), %v940_v13  ;;  %v928_v21 = vpack.c.bf16 (!%p189_p2), %v243_v20, %v242_v19  ;;  %v245_v23 = vld [vmem:[%s1298_s1 + $0x68] sm:$0xff] (!%p189_p2)  ;;  %v246_v25 = vld [vmem:[%s1298_s1 + $0x70] sm:$0xff] (!%p189_p2)  ;;  %v247_v26 = vld [vmem:[%s1298_s1 + $0x78] sm:$0xff] (!%p189_p2) }
   0xb   : > { %943 = vmatpush3.bf16.msra.mxu1 (!%p189_p2), %v940_v13  ;;  %v932_v24 = vpack.c.bf16 (!%p189_p2), %v245_v23, %v244_v22  ;;  %v936_v27 = vpack.c.bf16 (!%p189_p2), %v247_v26, %v246_v25  ;;  %v707_v31 = vld [vmem:[%s1298_s1 + $0x90] sm:$0xff] (!%p189_p2)  ;;  %v708_v32 = vld [vmem:[%s1298_s1 + $0x98] sm:$0xff] (!%p189_p2)  ;;  %v709_v34 = vld [vmem:[%s1298_s1 + $0xa0] sm:$0xff] (!%p189_p2) }
   0xc   : > { %v944_v33 = vpack.c.bf16 (!%p189_p2), %v708_v32, %v707_v31  ;;  %v710_v35 = vld [vmem:[%s1298_s1 + $0xa8] sm:$0xff] (!%p189_p2)  ;;  %v711_v37 = vld [vmem:[%s1298_s1 + $0xb0] sm:$0xff] (!%p189_p2)  ;;  %v712_v38 = vld [vmem:[%s1298_s1 + $0xb8] sm:$0xff] (!%p189_p2) }
   0xd   : > { %s1304_s26 = smov (!%p217_p3, %s696_s26), 7  ;;  %915 = vmatpush3.bf16.msra.mxu0 %v912_v5  ;;  %v948_v36 = vpack.c.bf16 %v710_v35, %v709_v34  ;;  %v952_v39 = vpack.c.bf16 %v712_v38, %v711_v37  ;;  %v713_v40 = vld [vmem:[%s1298_s1 + $0xc0] sm:$0xff]  ;;  %v714_v41 = vld [vmem:[%s1298_s1 + $0xc8] sm:$0xff]  ;;  %v715_v43 = vld [vmem:[%s1298_s1 + $0xd0] sm:$0xff] }
   0xe   : > { %s697_s8 = sshll.u32 %s1304_s26, 3  ;;  %917 = vmatprep.subr.bf16.mxu0 %v916_v8  ;;  %945 = vmatprep.subr.bf16.mxu1 %v944_v33  ;;  %v956_v42 = vpack.c.bf16 %v714_v41, %v713_v40  ;;  %v716_v44 = vld [vmem:[%s1298_s1 + $0xd8] sm:$0xff]  ;;  %v717_v46 = vld [vmem:[%s1298_s1 + $0xe0] sm:$0xff]  ;;  %v718_v47 = vld [vmem:[%s1298_s1 + $0xe8] sm:$0xff] }
   0xf   : > { %s1160_s20 = scalar_lea.vmem %s1297_s0, %s697_s8  ;;  %947 = vmatpush3.bf16.msra.mxu1 %v944_v33  ;;  %v960_v45 = vpack.c.bf16 %v716_v44, %v715_v43  ;;  %v964_v48 = vpack.c.bf16 %v718_v47, %v717_v46  ;;  %v719_v49 = vld [vmem:[%s1298_s1 + $0xf0] sm:$0xff]  ;;  %v720_v50 = vld [vmem:[%s1298_s1 + $0xf8] sm:$0xff]  ;;  %v498_v52 = vld [vmem:[%s1300_s3] sm:$0xff]  ;;  %s226_s16 = scalar_lea.vmem %s1302_s5, %s697_s8 }
  0x10   : > { %v228_v14 = vld [vmem:[%s1160_s20] sm:$0xff]  ;;  %v229_v28 = vld [vmem:[%s1160_s20 + $0x8] sm:$0xff]  ;;  %v230_v29 = vld [vmem:[%s1160_s20 + $0x10] sm:$0xff]  ;;  %949 = vmatprep.subr.bf16.mxu1 %v948_v36  ;;  %v968_v51 = vpack.c.bf16 %v720_v50, %v719_v49 }
  0x11   : > { %826 = vmatprep.mubr.f32.mxu0 %v228_v14  ;;  %919 = vmatpush3.bf16.msra.mxu0 %v916_v8  ;;  %v231_v30 = vld [vmem:[%s1160_s20 + $0x18] sm:$0xff]  ;;  %v499_v53 = vld [vmem:[%s1300_s3 + $0x8] sm:$0xff]  ;;  %v700_v55 = vld [vmem:[%s1299_s2] ss:$0 sm:$0xff] }
  0x12   : > { %921 = vmatprep.subr.bf16.mxu0 %v920_v15  ;;  %v972_v54 = vpack.c.bf16 %v499_v53, %v498_v52  ;;  %v500_v16 = vld [vmem:[%s1300_s3 + $0x10] sm:$0xff]  ;;  %v501_v17 = vld [vmem:[%s1300_s3 + $0x18] sm:$0xff]  ;;  %v502_v19 = vld [vmem:[%s1300_s3 + $0x20] sm:$0xff] }
  0x13   : > { %951 = vmatpush3.bf16.msra.mxu1 %v948_v36  ;;  %v503_v20 = vld [vmem:[%s1300_s3 + $0x28] sm:$0xff]  ;;  %v504_v22 = vld [vmem:[%s1300_s3 + $0x30] sm:$0xff]  ;;  %v505_v23 = vld [vmem:[%s1300_s3 + $0x38] sm:$0xff] }
  0x14   : > { %953 = vmatprep.subr.bf16.mxu1 %v952_v39  ;;  %v506_v25 = vld [vmem:[%s1300_s3 + $0x40] sm:$0xff]  ;;  %v507_v26 = vld [vmem:[%s1300_s3 + $0x48] sm:$0xff]  ;;  %v512_v34 = vld [vmem:[%s1300_s3 + $0x70] sm:$0xff] }
  0x15   : > { %923 = vmatpush3.bf16.msra.mxu0 %v920_v15  ;;  %v510_v31 = vld [vmem:[%s1300_s3 + $0x60] sm:$0xff]  ;;  %v511_v32 = vld [vmem:[%s1300_s3 + $0x68] sm:$0xff]  ;;  %v513_v35 = vld [vmem:[%s1300_s3 + $0x78] sm:$0xff] }
  0x16   : > { %925 = vmatprep.subr.bf16.mxu0 %v924_v18  ;;  %v996_v33 = vpack.c.bf16 %v511_v32, %v510_v31  ;;  %v1000_v36 = vpack.c.bf16 %v513_v35, %v512_v34  ;;  %v722_v37 = vld [vmem:[%s1299_s2 + $0x1] ss:$0 sm:$0xff] }
  0x17   : > { %955 = vmatpush3.bf16.msra.mxu1 %v952_v39 }
  0x18   : > { %957 = vmatprep.subr.bf16.mxu1 %v956_v42 }
  0x19   : > { %927 = vmatpush3.bf16.msra.mxu0 %v924_v18  ;;  %v976_v18 = vpack.c.bf16 %v501_v17, %v500_v16 }
  0x1a   : > { %929 = vmatprep.subr.bf16.mxu0 %v928_v21 }
  0x1b   : > { %959 = vmatpush3.bf16.msra.mxu1 %v956_v42 }
  0x1c   : > { %961 = vmatprep.subr.bf16.mxu1 %v960_v45 }
  0x1d   : > { %931 = vmatpush3.bf16.msra.mxu0 %v928_v21  ;;  %v980_v21 = vpack.c.bf16 %v503_v20, %v502_v19 }
  0x1e   : > { %933 = vmatprep.subr.bf16.mxu0 %v932_v24 }
  0x1f   : > { %963 = vmatpush3.bf16.msra.mxu1 %v960_v45 }
  0x20   : > { %965 = vmatprep.subr.bf16.mxu1 %v964_v48 }
  0x21   : > { %935 = vmatpush3.bf16.msra.mxu0 %v932_v24  ;;  %v984_v24 = vpack.c.bf16 %v505_v23, %v504_v22 }
  0x22   : > { %937 = vmatprep.subr.bf16.mxu0 %v936_v27 }
  0x23   : > { %967 = vmatpush3.bf16.msra.mxu1 %v964_v48 }
  0x24   : > { %969 = vmatprep.subr.bf16.mxu1 %v968_v51 }
  0x25   : > { %939 = vmatpush3.bf16.msra.mxu0 %v936_v27  ;;  %v988_v27 = vpack.c.bf16 %v507_v26, %v506_v25 }
  0x26   : > { %973 = vmatprep.subr.bf16.mxu0 %v972_v54 }
  0x27   : > { %971 = vmatpush3.bf16.msra.mxu1 %v968_v51 }
  0x28   : > { %827 = vmatmul.mubr.f32.vlgmr.msra.gmra.mrb[0].mxu0 %v229_v28  ;;  %1004 = vmatprep.subr.bf16.mxu1 %v972_v54  ;;  %v508_v28 = vld [vmem:[%s1300_s3 + $0x50] sm:$0xff] }
  0x29   : > { %829 = vmatprep.mubr.f32.mxu0 %v230_v29  ;;  %975 = vmatpush3.bf16.msra.mxu0 %v972_v54  ;;  %v509_v29 = vld [vmem:[%s1300_s3 + $0x58] sm:$0xff] }
  0x2a   : > { %977 = vmatprep.subr.bf16.mxu0 %v976_v18 }
  0x2c   : > { %830 = vmatmul.mubr.f32.gmra.mrb[2].mxu0 %v231_v30  ;;  %v992_v30 = vpack.c.bf16 %v509_v29, %v508_v28 }
  0x2d   : > { %979 = vmatpush3.bf16.msra.mxu0 %v976_v18 }
  0x2e   : > { %981 = vmatprep.subr.bf16.mxu0 %v980_v21 }
  0x31   : > { %983 = vmatpush3.bf16.msra.mxu0 %v980_v21 }
  0x32   : > { %985 = vmatprep.subr.bf16.mxu0 %v984_v24 }
  0x35   : > { %987 = vmatpush3.bf16.msra.mxu0 %v984_v24 }
  0x36   : > { %989 = vmatprep.subr.bf16.mxu0 %v988_v27 }
  0x39   : > { %991 = vmatpush3.bf16.msra.mxu0 %v988_v27 }
  0x3a   : > { %993 = vmatprep.subr.bf16.mxu0 %v992_v30 }
  0x3d   : > { %995 = vmatpush3.bf16.msra.mxu0 %v992_v30 }
  0x3e   : > { %997 = vmatprep.subr.bf16.mxu0 %v996_v33 }
  0x41   : > { %999 = vmatpush3.bf16.msra.mxu0 %v996_v33 }
  0x42   : > { %1001 = vmatprep.subr.bf16.mxu0 %v1000_v36 }
  0x45   : > { %1003 = vmatpush3.bf16.msra.mxu0 %v1000_v36 }
  0xfb   : > { %v828_v56 = vpop.f32.mrb[0].mxu0 }
  0xfc   : > { %v327_v57 = vadd.f32 %v828_v56, %v700_v55  ;;  %v321_v58 = vpop.f32.mrb[1].mxu0 }
  0xfd   : > { %v322_v59 = vadd.f32 %v700_v55, %v321_v58 }
  0xfe   : > { %v702_v60 = vmul.f32 -1.442695, %v327_v57 }
  0xff   : > { %v701_v61 = vmul.f32 -1.442695, %v322_v59  ;;  %v831_v62 = vpop.f32.mrb[2].mxu0 }
 0x100   : > { %1028 = vpow2.f32 %v702_v60  ;;  %v337_v63 = vadd.f32 %v831_v62, %v700_v55  ;;  %v331_v0 = vpop.f32.mrb[3].mxu0  ;;  %v727_v62 = vld [vmem:[%s1301_s4] ss:$0 sm:$0xff] }
 0x101   : > { %1030 = vpow2.f32 %v701_v61  ;;  %v332_v1 = vadd.f32 %v700_v55, %v331_v0 }
 0x102   : > { %v704_v2 = vmul.f32 -1.442695, %v337_v63 }
 0x103   : > { %v703_v3 = vmul.f32 -1.442695, %v332_v1 }
 0x104   : > { %1032 = vpow2.f32 %v704_v2 }
 0x105   : > { %1034 = vpow2.f32 %v703_v3 }
 0x10a   : > { %v1029_v4 = vpop.eup %1028 }
 0x10b   : > { %v1031_v5 = vpop.eup %1030  ;;  %v353_v6 = vadd.f32 1.0, %v1029_v4 }
 0x10c   : > { %v352_v7 = vadd.f32 1.0, %v1031_v5 }
 0x10e   : > { %v1033_v8 = vpop.eup %1032  ;;  %1036 = vrcp.f32 %v352_v7 }
 0x10f   : > { %v1035_v9 = vpop.eup %1034  ;;  %1038 = vrcp.f32 %v353_v6  ;;  %v355_v10 = vadd.f32 1.0, %v1033_v8 }
 0x110   : > { %v354_v11 = vadd.f32 1.0, %v1035_v9 }
 0x112   : > { %1040 = vrcp.f32 %v354_v11 }
 0x113   : > { %1042 = vrcp.f32 %v355_v10 }
 0x118   : > { %v1037_v12 = vpop.eup %1036 }
 0x119   : > { %v1039_v13 = vpop.eup %1038  ;;  %864 = vmatprep.mubr.f32.mxu1 %v1037_v12 }
 0x11a   : > { %865 = vmatmul.mubr.f32.vlgmr.msra.gmra.mrb[0].mxu1 %v1039_v13 }
 0x11b   : > { %1012 = vmatpush3.bf16.msra.mxu1 %v972_v54 }
 0x11c   : > { %v1041_v14 = vpop.eup %1040  ;;  %1005 = vmatprep.subr.bf16.mxu1 %v976_v18 }
 0x11d   : > { %v1043_v15 = vpop.eup %1042  ;;  %867 = vmatprep.mubr.f32.mxu1 %v1041_v14 }
 0x11e   : > { %868 = vmatmul.mubr.f32.gmra.mrb[2].mxu1 %v1043_v15 }
 0x11f   : > { %1013 = vmatpush3.bf16.msra.mxu1 %v976_v18 }
 0x120   : > { %1006 = vmatprep.subr.bf16.mxu1 %v980_v21 }
 0x123   : > { %1014 = vmatpush3.bf16.msra.mxu1 %v980_v21 }
 0x124   : > { %1007 = vmatprep.subr.bf16.mxu1 %v984_v24 }
 0x127   : > { %1015 = vmatpush3.bf16.msra.mxu1 %v984_v24 }
 0x128   : > { %1008 = vmatprep.subr.bf16.mxu1 %v988_v27 }
 0x12b   : > { %1016 = vmatpush3.bf16.msra.mxu1 %v988_v27 }
 0x12c   : > { %1009 = vmatprep.subr.bf16.mxu1 %v992_v30 }
 0x12f   : > { %1017 = vmatpush3.bf16.msra.mxu1 %v992_v30 }
 0x130   : > { %1010 = vmatprep.subr.bf16.mxu1 %v996_v33 }
 0x133   : > { %1018 = vmatpush3.bf16.msra.mxu1 %v996_v33 }
 0x134   : > { %1011 = vmatprep.subr.bf16.mxu1 %v1000_v36 }
 0x137   : > { %1019 = vmatpush3.bf16.msra.mxu1 %v1000_v36 }
 0x1ed   : > { %v866_v38 = vpop.f32.mrb[0].mxu1 }
 0x1ee   : > { %v461_v39 = vadd.f32 %v866_v38, %v722_v37  ;;  %v455_v40 = vpop.f32.mrb[1].mxu1 }
 0x1ef   : > { %v456_v41 = vadd.f32 %v722_v37, %v455_v40 }
 0x1f0   : > { %v724_v42 = vmul.f32 -1.442695, %v461_v39 }
 0x1f1   : > { %v723_v43 = vmul.f32 -1.442695, %v456_v41  ;;  %v869_v44 = vpop.f32.mrb[2].mxu1 }
 0x1f2   : > { %1044 = vpow2.f32 %v724_v42  ;;  %v471_v45 = vadd.f32 %v869_v44, %v722_v37  ;;  %v465_v46 = vpop.f32.mrb[3].mxu1 }
 0x1f3   : > { %1046 = vpow2.f32 %v723_v43  ;;  %v466_v47 = vadd.f32 %v722_v37, %v465_v46 }
 0x1f4   : > { %v726_v48 = vmul.f32 -1.442695, %v471_v45 }
 0x1f5   : > { %v725_v49 = vmul.f32 -1.442695, %v466_v47 }
 0x1f6   : > { %1048 = vpow2.f32 %v726_v48 }
 0x1f7   : > { %1050 = vpow2.f32 %v725_v49 }
 0x1fc   : > { %v1045_v50 = vpop.eup %1044 }
 0x1fd   : > { %v1047_v51 = vpop.eup %1046  ;;  %v487_v52 = vadd.f32 1.0, %v1045_v50 }
 0x1fe   : > { %v486_v53 = vadd.f32 1.0, %v1047_v51 }
 0x200   : > { %v1049_v54 = vpop.eup %1048  ;;  %1052 = vrcp.f32 %v486_v53 }
 0x201   : > { %v1051_v55 = vpop.eup %1050  ;;  %1054 = vrcp.f32 %v487_v52  ;;  %v489_v56 = vadd.f32 1.0, %v1049_v54 }
 0x202   : > { %v488_v57 = vadd.f32 1.0, %v1051_v55 }
 0x204   : > { %1056 = vrcp.f32 %v488_v57 }
 0x205   : > { %1058 = vrcp.f32 %v489_v56 }
 0x20a   : > { %v1053_v58 = vpop.eup %1052 }
 0x20b   : > { %v1055_v59 = vpop.eup %1054  ;;  %902 = vmatprep.mubr.f32.mxu0 %v1053_v58 }
 0x20c   : > { %903 = vmatmul.mubr.f32.vlgmr.msra.gmra.mrb[4].mxu0 %v1055_v59 }
 0x20e   : > { %v1057_v60 = vpop.eup %1056 }
 0x20f   : > { %v1059_v61 = vpop.eup %1058  ;;  %905 = vmatprep.mubr.f32.mxu1 %v1057_v60 }
 0x210   : > { %906 = vmatmul.mubr.f32.vlgmr.msra.gmra.mrb[4].mxu1 %v1059_v61 }
 0x2df   : > { %v904_v63 = vpop.f32.mrb[4].mxu0 }
 0x2e0   : > { %v593_v0 = vadd.f32 %v904_v63, %v727_v62  ;;  %v587_v1 = vpop.f32.mrb[5].mxu0 }
 0x2e1   : > { %v588_v2 = vadd.f32 %v727_v62, %v587_v1 }
 0x2e2   : > { %v729_v3 = vmul.f32 -1.442695, %v593_v0 }
 0x2e3   : > { %v728_v4 = vmul.f32 -1.442695, %v588_v2  ;;  %v907_v5 = vpop.f32.mrb[4].mxu1 }
 0x2e4   : > { %1060 = vpow2.f32 %v729_v3  ;;  %v603_v6 = vadd.f32 %v907_v5, %v727_v62  ;;  %v597_v7 = vpop.f32.mrb[5].mxu1 }
 0x2e5   : > { %1062 = vpow2.f32 %v728_v4  ;;  %v598_v8 = vadd.f32 %v727_v62, %v597_v7 }
 0x2e6   : > { %v731_v9 = vmul.f32 -1.442695, %v603_v6 }
 0x2e7   : > { %v730_v10 = vmul.f32 -1.442695, %v598_v8 }
 0x2e8   : > { %1064 = vpow2.f32 %v731_v9 }
 0x2e9   : > { %1066 = vpow2.f32 %v730_v10 }
 0x2ee   : > { %v1061_v11 = vpop.eup %1060 }
 0x2ef   : > { %v1063_v12 = vpop.eup %1062  ;;  %v619_v13 = vadd.f32 1.0, %v1061_v11 }
 0x2f0   : > { %v618_v14 = vadd.f32 1.0, %v1063_v12 }
 0x2f2   : > { %v1065_v15 = vpop.eup %1064  ;;  %1068 = vrcp.f32 %v618_v14 }
 0x2f3   : > { %v1067_v16 = vpop.eup %1066  ;;  %1070 = vrcp.f32 %v619_v13  ;;  %v621_v17 = vadd.f32 1.0, %v1065_v15 }
 0x2f4   : > { %v620_v18 = vadd.f32 1.0, %v1067_v16 }
 0x2f6   : > { %1072 = vrcp.f32 %v620_v18 }
 0x2f7   : > { %1074 = vrcp.f32 %v621_v17 }
 0x2fc   : > { %v1069_v19 = vpop.eup %1068 }
 0x2fd   : > { %v1071_v20 = vpop.eup %1070  ;;  %631 = vst.msk [vmem:[%s226_s16] sm:$0xff] %vm630_vm0, %v1069_v19 }
 0x2fe   : > { %632 = vst.msk [vmem:[%s226_s16 + $0x8] sm:$0xff] %vm630_vm0, %v1071_v20 }
 0x300   : > { %v1073_v21 = vpop.eup %1072 }
 0x301   : > { %v1075_v22 = vpop.eup %1074  ;;  %633 = vst.msk [vmem:[%s226_s16 + $0x10] sm:$0xff] %vm630_vm0, %v1073_v21 }
 0x302   : > { %634 = vst.msk [vmem:[%s226_s16 + $0x18] sm:$0xff] %vm630_vm0, %v1075_v22 }
 0x303 PF: > { %s15_s18 = sadd.s32 1, %s1082_s18  }
 0x304   : > { %p12_p4 = scmp.ge.s32.totalorder %s15_s18, 4  }
 0x306   :  { %14 = sbr.rel (!%p12_p4) target bundleno = 1 (0x1), region = 72 }

</bundles_post_ra>
